<compile_context>
chip_gen: v7x
topology: tpu7x:2x2x1
jax: 0.10.0
libtpu: 0.0.40
codegen_flags: <defaults>
</compile_context>

<pallas_src>
import numpy as np
import jax
import jax.numpy as jnp
from jax.experimental import pallas as pl
from jax.experimental.pallas import tpu as pltpu


def _round_up(x, m):
    return (x + m - 1) // m * m


# --------------------------------------------------------------------------
# Fused circuit kernel (feature-major: activations are (width, batch_tile))
# --------------------------------------------------------------------------

def _make_circuit_kernel(num_layers, layer_dims):
    """Leaf layer + `num_layers` einsum layers + root mixture, fully fused."""
    tiny = float(np.finfo(np.float32).tiny)

    def kernel(oh_ref, mleaf_ref, *rest):
        # rest = [w1T_0, grpT_0, mexp_0, ..., w1T_{nl-1}, grpT_{nl-1},
        #         mexp_{nl-1}, log_mixT, out]
        layer_refs = rest[: 3 * num_layers]
        logmix_ref = rest[3 * num_layers]
        out_ref = rest[3 * num_layers + 1]

        # ---- Leaf layer: int8 one-hot -> f32 cast (VPU, hidden under the MXU
        # dot), then a single matmul against the scope/log-theta block matrix.
        oh = oh_ref[...].astype(jnp.float32)                     # (ndk_pad, tb)
        cur = jnp.dot(mleaf_ref[...], oh,
                      preferred_element_type=jnp.float32)        # (L*ni, tb)
        tb = cur.shape[-1]

        # ---- Einsum (sum-product) layers.
        # cur rows: child-major, children ordered [left 0..P-1 | right 0..P-1],
        # each child carrying I contiguous state rows.
        for t in range(num_layers):
            P, S, I = layer_dims[t]
            PI = P * I
            w1 = layer_refs[3 * t][...]          # (S*P*I, P*I)
            grp = layer_refs[3 * t + 1][...]     # (P*S,   S*P*I)  0/1 sum over j
            mexp = layer_refs[3 * t + 2][...]    # (P*S,   2*P)    0/1 lmax+rmax

            if I % 8 == 0:
                # Per-child max stabilization (matches the reference /
                # EinsumNetwork semantics).  I is a multiple of the sublane
                # tile, so these reshapes are pure re-tilings.
                cur3 = cur.reshape(2 * P, I, tb)
                m3 = jnp.max(cur3, axis=1, keepdims=True)        # (2P, 1, tb)
                e = jnp.exp(cur3 - m3).reshape(2 * PI, tb)       # (2P*I, tb)
                mch = m3.reshape(2 * P, tb)                      # (2P, tb)
                madd = jnp.dot(mexp, mch,
                               preferred_element_type=jnp.float32)  # (P*S, tb)
            else:
                # Fallback (never taken at these sizes): per-layer global max.
                m = jnp.max(cur, axis=0, keepdims=True)          # (1, tb)
                e = jnp.exp(cur - m)
                madd = 2.0 * jnp.broadcast_to(m, (P * S, tb))

            el = e[:PI]                                          # left children
            er = e[PI:]                                          # right children
            # a[s*PI + p*I + j, b] = sum_i e_l[p,i,b] * w[p,s,i,j]
            a = jnp.dot(w1, el, preferred_element_type=jnp.float32)
            # Right-child expansion: sublane tile (replaces the old er_sel dot).
            r = er if S == 1 else jnp.concatenate([er] * S, axis=0)
            # val[p*S + s, b] = sum_{i,j} e_l[p,i] e_r[p,j] w[p,s,i,j]
            val = jnp.dot(grp, a * r, preferred_element_type=jnp.float32)
            # tiny-clamp only guards a genuine f32 underflow of val; with
            # per-child stabilization it is a no-op in practice.
            cur = jnp.log(jnp.maximum(val, tiny)) + madd         # (P*S, tb)

        # ---- Root mixture over repetitions (logsumexp), lane-dense output.
        c = cur + logmix_ref[...]                                # (nr, tb)+(nr,1)
        cm = jnp.max(c, axis=0, keepdims=True)                   # (1, tb)
        out_ref[...] = jnp.log(jnp.sum(jnp.exp(c - cm), axis=0,
                                       keepdims=True)) + cm      # (1, tb)

    return kernel


def _vmem_limit_bytes():
    """Per-generation scoped-VMEM request (~48 MiB v7x, ~96 MiB v5e/v6e)."""
    try:
        cap = int(pltpu.get_tpu_info().vmem_capacity_bytes)
        if cap <= 0:
            raise ValueError
        return int(max(min(cap * 3 // 4, 100 * 1024 * 1024), 32 * 1024 * 1024))
    except Exception:  # pragma: no cover - conservative universal fallback
        return 48 * 1024 * 1024


def _pick_batch_tile(B, block_b):
    """Batch tile: big enough to amortize the ~0.35us/step pipeline cost, a
    multiple of 128 lanes when tiled, and >=2 grid steps (v7x has 2 TCs)."""
    assert block_b % 128 == 0
    B8 = _round_up(max(B, 1), 8)
    if B8 < 256:
        return B8, B8                      # tiny batch: one full-array block
    tb = min(block_b, _round_up(-(-B8 // 2), 128))
    return tb, _round_up(B8, tb)


def circuit_forward(ohT, consts, *, block_b=512):
    """Run the fused circuit kernel over batch tiles. ohT: (ndk_pad, B) int8."""
    ndk_pad, B = ohT.shape
    mleafT = consts["mleafT"]
    layer_mats = consts["layer_mats"]
    layer_dims = consts["layer_dims"]
    log_mixT = consts["log_mixT"]

    tb, Bp = _pick_batch_tile(B, block_b)
    if Bp != B:
        ohT = jnp.pad(ohT, ((0, 0), (0, Bp - B)))
    nb = Bp // tb

    flat_mats = [m for trip in layer_mats for m in trip]
    in_specs = [pl.BlockSpec((ndk_pad, tb), lambda i: (0, i)),
                pl.BlockSpec(mleafT.shape, lambda i: (0, 0))]
    for m in flat_mats:
        in_specs.append(pl.BlockSpec(m.shape, lambda i: (0, 0)))
    in_specs.append(pl.BlockSpec(log_mixT.shape, lambda i: (0, 0)))

    out = pl.pallas_call(
        _make_circuit_kernel(len(layer_mats), layer_dims),
        out_shape=jax.ShapeDtypeStruct((1, Bp), jnp.float32),
        grid=(nb,),
        in_specs=in_specs,
        out_specs=pl.BlockSpec((1, tb), lambda i: (0, i)),
        compiler_params=pltpu.CompilerParams(
            dimension_semantics=("parallel",),
            vmem_limit_bytes=_vmem_limit_bytes()),
    )(ohT, mleafT, *flat_mats, log_mixT)
    return out[0, :B, None]                                      # (B, 1)


# --------------------------------------------------------------------------
# Structure + parameters (deterministic, synthetic — no checkpoint load)
# --------------------------------------------------------------------------

def build_structure(nd, nl, nr, seed=0):
    # Deterministic stand-in for Graph.random_binary_trees.  Children at every
    # level are ordered [left halves 0..P-1 | right halves 0..P-1] so the
    # kernel's contiguous left/right blocks need no permutations.
    rng = np.random.default_rng(seed)
    scopes = [rng.permutation(nd) for _ in range(nr)]
    for _ in range(nl):
        lefts, rights = [], []
        for sc in scopes:
            h = (len(sc) + 1) // 2
            lefts.append(sc[:h])
            rights.append(sc[h:])
        scopes = lefts + rights
    L = len(scopes)                                              # nr * 2^nl
    scope_mat = np.zeros((L, nd), dtype=np.float32)
    for l, sc in enumerate(scopes):
        scope_mat[l, np.asarray(sc, dtype=np.int64)] = 1.0
    return jnp.asarray(scope_mat)


def init_params(key, nd, nk, ns, ni, nl, nr, num_classes=1):
    keys = jax.random.split(key, nl + 2)
    leaf_raw = 0.5 * jax.random.normal(keys[0], (nd, ni, nk), jnp.float32)
    log_theta = jax.nn.log_softmax(leaf_raw, axis=-1)

    layer_ws = []
    d_in = ni
    for t in range(1, nl + 1):
        P = nr * (2 ** (nl - t))
        d_out = ns if t < nl else num_classes
        raw = 0.5 * jax.random.normal(keys[t], (P, d_out, d_in, d_in), jnp.float32)
        w = jax.nn.softmax(raw.reshape(P, d_out, d_in * d_in), axis=-1)
        layer_ws.append(w.reshape(P, d_out, d_in, d_in))
        d_in = d_out

    mix_raw = 0.5 * jax.random.normal(keys[-1], (num_classes, nr), jnp.float32)
    log_mix = jax.nn.log_softmax(mix_raw, axis=-1)
    return {"log_theta": log_theta, "layer_ws": layer_ws, "log_mix": log_mix}


def precompute_circuit(params, scope):
    """One-time preprocessing into MXU-friendly (transposed) block matrices."""
    log_theta = params["log_theta"]                              # (nd, ni, nk)
    nd, ni, nk = log_theta.shape
    L = scope.shape[0]
    ndk = nd * nk
    ndk_pad = _round_up(ndk, 32)                                 # int8-friendly rows

    # mleafT[l*ni+i, d*nk+k] = scope[l,d] * log_theta[d,i,k]
    mleafT = jnp.einsum("ld,dik->lidk", scope, log_theta).reshape(L * ni, ndk)
    if ndk_pad != ndk:
        mleafT = jnp.pad(mleafT, ((0, 0), (0, ndk_pad - ndk)))

    layer_mats, layer_dims = [], []
    for w in params["layer_ws"]:                                 # (P, S, I, I)
        P, S, I, _ = w.shape
        eyeP = np.eye(P, dtype=np.float32)
        # w1T[s*PI + p*I + j, q*I + i] = w[p,s,i,j] if q == p else 0
        w1T = jnp.einsum("psij,pq->spjqi", w, jnp.asarray(eyeP)
                         ).reshape(S * P * I, P * I)
        # grpT[p*S + s, t*PI + q*I + j] = 1 iff t == s and q == p   (sum over j)
        grpT = np.einsum("pq,st,j->pstqj", eyeP, np.eye(S, dtype=np.float32),
                         np.ones(I, np.float32)).reshape(P * S, S * P * I)
        # mexp[p*S + s, c] = 1 iff c == p or c == P + p   (lmax + rmax add-back)
        mexp = np.zeros((P * S, 2 * P), np.float32)
        rows = np.arange(P * S)
        mexp[rows, rows // S] = 1.0
        mexp[rows, P + rows // S] = 1.0
        layer_mats.append((w1T, jnp.asarray(grpT.astype(np.float32)),
                           jnp.asarray(mexp)))
        layer_dims.append((int(P), int(S), int(I)))

    log_mixT = jnp.transpose(params["log_mix"])                  # (nr, num_classes=1)
    return {"mleafT": mleafT, "layer_mats": layer_mats,
            "layer_dims": tuple(layer_dims), "log_mixT": log_mixT,
            "ndk_pad": int(ndk_pad)}


# --------------------------------------------------------------------------
# Forward pass (GraphSPNNaiveCatE.forward)
# --------------------------------------------------------------------------

def graphspn_forward(consts, x, a, nd_n, nk_n, nk_e, *, block_b=512):
    B = x.shape[0]
    nd = nd_n + nd_n * nd_n
    nk = max(nk_n, nk_e)

    # ohe2cat + concatenation (glue; matches the PyTorch module).
    x_cat = jnp.argmax(x, axis=2)                                # (B, nd_n)
    a_cat = jnp.argmax(a, axis=1)                                # (B, nd_n, nd_n)
    z = jnp.concatenate([x_cat[:, None, :], a_cat], axis=1).reshape(B, nd)

    # int8 flat one-hot, transposed so batch rides the 128-lane axis.
    oh = jax.nn.one_hot(z, nk, dtype=jnp.int8).reshape(B, nd * nk)
    ohT = jnp.transpose(oh)                                      # (nd*nk, B)
    ndk_pad = consts["ndk_pad"]
    if ndk_pad != nd * nk:
        ohT = jnp.pad(ohT, ((0, ndk_pad - nd * nk), (0, 0)))
    return circuit_forward(ohT, consts, block_b=block_b)         # (B, 1)


def make_forward(params, scope, nd_n, nk_n, nk_e, *, block_b=512):
    """Hoist the parameter preprocessing out of the per-call path (runs once)."""
    consts = precompute_circuit(params, scope)

    def fwd(x, a):
        return graphspn_forward(consts, x, a, nd_n, nk_n, nk_e, block_b=block_b)

    return jax.jit(fwd)


# Pure-JAX oracle of the same circuit (per-child max stabilization, mirroring
# the EinsumNetwork log-einsum-exp), used as a correctness check.
def _reference_forward(params, scope, x, a, nd_n, nk_n, nk_e):
    B = x.shape[0]
    nd = nd_n + nd_n * nd_n
    nk = max(nk_n, nk_e)
    x_cat = jnp.argmax(x, axis=2)
    a_cat = jnp.argmax(a, axis=1)
    z = jnp.concatenate([x_cat[:, None, :], a_cat], axis=1).reshape(B, nd)
    oh = jax.nn.one_hot(z, nk, dtype=jnp.float32)
    ll = jnp.einsum("bdk,dik->bdi", oh, params["log_theta"])
    cur = jnp.einsum("ld,bdi->lbi", scope, ll)                   # (L, B, ni)
    for w in params["layer_ws"]:                                 # (P, S, I, I)
        P = w.shape[0]
        left, right = cur[:P], cur[P:]                           # contiguous halves
        lmax = jnp.max(left, -1, keepdims=True)
        rmax = jnp.max(right, -1, keepdims=True)
        val = jnp.einsum("pbi,pbj,psij->pbs", jnp.exp(left - lmax),
                         jnp.exp(right - rmax), w)
        cur = jnp.log(val) + lmax + rmax
    c = cur[:, :, 0].T + params["log_mix"]                       # (B, nr)
    m = jnp.max(c, -1, keepdims=True)
    return jnp.log(jnp.sum(jnp.exp(c - m), -1, keepdims=True)) + m


# --------------------------------------------------------------------------

if __name__ == "__main__":
    # Small shapes consistent with the module's constructor.
    nd_n, nk_n, nk_e = 4, 4, 3          # nodes / node types / edge types
    ns, ni, nl, nr = 8, 8, 2, 2         # sums / input dists / layers / repetitions
    B = 2

    nd = nd_n + nd_n * nd_n             # 20 categorical variables
    nk = max(nk_n, nk_e)                # shared category count of the leaf array

    key = jax.random.PRNGKey(0)
    kx, ka, kp = jax.random.split(key, 3)

    # One-hot node features (B, nd_n, nk_n) and NCHW one-hot adjacency
    # (B, nk_e, nd_n, nd_n), matching the PyTorch ohe2cat convention.
    x_cat = jax.random.randint(kx, (B, nd_n), 0, nk_n)
    a_cat = jax.random.randint(ka, (B, nd_n, nd_n), 0, nk_e)
    x = jax.nn.one_hot(x_cat, nk_n, dtype=jnp.float32)
    a = jnp.moveaxis(jax.nn.one_hot(a_cat, nk_e, dtype=jnp.float32), -1, 1)

    scope = build_structure(nd, nl, nr, seed=0)
    params = init_params(kp, nd, nk, ns, ni, nl, nr)

    fwd = make_forward(params, scope, nd_n, nk_n, nk_e)
    out = jax.block_until_ready(fwd(x, a))
    assert out.shape == (B, 1)

    ref = _reference_forward(params, scope, x, a, nd_n, nk_n, nk_e)
    np.testing.assert_allclose(np.asarray(out), np.asarray(ref),
                               rtol=1e-4, atol=1e-4)

    print("KERNEL_OK")
</pallas_src>

<mosaic_0001>
module attributes {stable_mosaic.version = 11 : i64} {
  func.func @kernel(%arg0: i32, %arg1: memref<96x8xi8, #tpu.memory_space<vmem>>, %arg2: memref<64x96xf32, #tpu.memory_space<vmem>>, %arg3: memref<256x32xf32, #tpu.memory_space<vmem>>, %arg4: memref<32x256xf32, #tpu.memory_space<vmem>>, %arg5: memref<32x8xf32, #tpu.memory_space<vmem>>, %arg6: memref<16x16xf32, #tpu.memory_space<vmem>>, %arg7: memref<2x16xf32, #tpu.memory_space<vmem>>, %arg8: memref<2x4xf32, #tpu.memory_space<vmem>>, %arg9: memref<2x1xf32, #tpu.memory_space<vmem>>, %arg10: memref<1x8xf32, #tpu.memory_space<vmem>>) attributes {dimension_semantics = [#tpu.dimension_semantics<parallel>], iteration_bounds = array<i64: 1>, scalar_prefetch = 0 : i64, scratch_operands = 0 : i64, tpu.core_type = #tpu.core_type<tc>, window_params = [{transform_indices = @transform_0, window_bounds = array<i64: 96, 8>}, {pipeline_mode = #tpu.pipeline_mode<synchronous>, transform_indices = @transform_1, window_bounds = array<i64: 64, 96>}, {pipeline_mode = #tpu.pipeline_mode<synchronous>, transform_indices = @transform_2, window_bounds = array<i64: 256, 32>}, {pipeline_mode = #tpu.pipeline_mode<synchronous>, transform_indices = @transform_3, window_bounds = array<i64: 32, 256>}, {pipeline_mode = #tpu.pipeline_mode<synchronous>, transform_indices = @transform_4, window_bounds = array<i64: 32, 8>}, {pipeline_mode = #tpu.pipeline_mode<synchronous>, transform_indices = @transform_5, window_bounds = array<i64: 16, 16>}, {pipeline_mode = #tpu.pipeline_mode<synchronous>, transform_indices = @transform_6, window_bounds = array<i64: 2, 16>}, {pipeline_mode = #tpu.pipeline_mode<synchronous>, transform_indices = @transform_7, window_bounds = array<i64: 2, 4>}, {pipeline_mode = #tpu.pipeline_mode<synchronous>, transform_indices = @transform_8, window_bounds = array<i64: 2, 1>}, {transform_indices = @transform_9, window_bounds = array<i64: 1, 8>}]} {
    %c0 = arith.constant 0 : index
    %c0_0 = arith.constant 0 : index
    %0 = vector.load %arg1[%c0, %c0_0] : memref<96x8xi8, #tpu.memory_space<vmem>>, vector<96x8xi8>
    %1 = arith.sitofp %0 : vector<96x8xi8> to vector<96x8xf32>
    %c0_1 = arith.constant 0 : index
    %c0_2 = arith.constant 0 : index
    %2 = vector.load %arg2[%c0_1, %c0_2] : memref<64x96xf32, #tpu.memory_space<vmem>>, vector<64x96xf32>
    %cst = arith.constant dense<0.000000e+00> : vector<64x8xf32>
    %3 = tpu.matmul %2, %1, %cst {dimension_numbers = #tpu.dot_dimension_numbers<[1], [0], [0], [1], [0, 0, 1, 1], [], []>} : vector<64x96xf32>, vector<96x8xf32>, vector<64x8xf32> -> vector<64x8xf32>
    %c0_3 = arith.constant 0 : index
    %c0_4 = arith.constant 0 : index
    %4 = vector.load %arg3[%c0_3, %c0_4] : memref<256x32xf32, #tpu.memory_space<vmem>>, vector<256x32xf32>
    %c0_5 = arith.constant 0 : index
    %c0_6 = arith.constant 0 : index
    %5 = vector.load %arg4[%c0_5, %c0_6] : memref<32x256xf32, #tpu.memory_space<vmem>>, vector<32x256xf32>
    %c0_7 = arith.constant 0 : index
    %c0_8 = arith.constant 0 : index
    %6 = vector.load %arg5[%c0_7, %c0_8] : memref<32x8xf32, #tpu.memory_space<vmem>>, vector<32x8xf32>
    %7 = vector.shape_cast %3 : vector<64x8xf32> to vector<8x8x8xf32>
    %cst_9 = arith.constant dense<0xFF800000> : vector<8x8xf32>
    %8 = vector.multi_reduction <maximumf>, %7, %cst_9 [1] : vector<8x8x8xf32> to vector<8x8xf32>
    %9 = vector.shape_cast %8 : vector<8x8xf32> to vector<8x1x8xf32>
    %10 = vector.broadcast %9 : vector<8x1x8xf32> to vector<8x8x8xf32>
    %11 = arith.subf %7, %10 : vector<8x8x8xf32>
    %12 = math.exp %11 : vector<8x8x8xf32>
    %13 = vector.shape_cast %12 : vector<8x8x8xf32> to vector<64x8xf32>
    %14 = vector.shape_cast %9 : vector<8x1x8xf32> to vector<8x8xf32>
    %cst_10 = arith.constant dense<0.000000e+00> : vector<32x8xf32>
    %15 = tpu.matmul %6, %14, %cst_10 {dimension_numbers = #tpu.dot_dimension_numbers<[1], [0], [0], [1], [0, 0, 1, 1], [], []>} : vector<32x8xf32>, vector<8x8xf32>, vector<32x8xf32> -> vector<32x8xf32>
    %16 = vector.extract_strided_slice %13 {offsets = [0, 0], sizes = [32, 8], strides = [1, 1]} : vector<64x8xf32> to vector<32x8xf32>
    %17 = vector.extract_strided_slice %13 {offsets = [32, 0], sizes = [32, 8], strides = [1, 1]} : vector<64x8xf32> to vector<32x8xf32>
    %cst_11 = arith.constant dense<0.000000e+00> : vector<256x8xf32>
    %18 = tpu.matmul %4, %16, %cst_11 {dimension_numbers = #tpu.dot_dimension_numbers<[1], [0], [0], [1], [0, 0, 1, 1], [], []>} : vector<256x32xf32>, vector<32x8xf32>, vector<256x8xf32> -> vector<256x8xf32>
    %19 = tpu.concatenate %17, %17, %17, %17, %17, %17, %17, %17 in 0 : vector<32x8xf32>, vector<32x8xf32>, vector<32x8xf32>, vector<32x8xf32>, vector<32x8xf32>, vector<32x8xf32>, vector<32x8xf32>, vector<32x8xf32> -> vector<256x8xf32>
    %20 = arith.mulf %18, %19 : vector<256x8xf32>
    %cst_12 = arith.constant dense<0.000000e+00> : vector<32x8xf32>
    %21 = tpu.matmul %5, %20, %cst_12 {dimension_numbers = #tpu.dot_dimension_numbers<[1], [0], [0], [1], [0, 0, 1, 1], [], []>} : vector<32x256xf32>, vector<256x8xf32>, vector<32x8xf32> -> vector<32x8xf32>
    %cst_13 = arith.constant 1.17549435E-38 : f32
    %22 = vector.broadcast %cst_13 : f32 to vector<32x8xf32>
    %23 = arith.maximumf %21, %22 : vector<32x8xf32>
    %24 = math.log %23 : vector<32x8xf32>
    %25 = arith.addf %24, %15 : vector<32x8xf32>
    %c0_14 = arith.constant 0 : index
    %c0_15 = arith.constant 0 : index
    %26 = vector.load %arg6[%c0_14, %c0_15] : memref<16x16xf32, #tpu.memory_space<vmem>>, vector<16x16xf32>
    %c0_16 = arith.constant 0 : index
    %c0_17 = arith.constant 0 : index
    %27 = vector.load %arg7[%c0_16, %c0_17] : memref<2x16xf32, #tpu.memory_space<vmem>>, vector<2x16xf32>
    %c0_18 = arith.constant 0 : index
    %c0_19 = arith.constant 0 : index
    %28 = vector.load %arg8[%c0_18, %c0_19] : memref<2x4xf32, #tpu.memory_space<vmem>>, vector<2x4xf32>
    %29 = vector.shape_cast %25 : vector<32x8xf32> to vector<4x8x8xf32>
    %cst_20 = arith.constant dense<0xFF800000> : vector<4x8xf32>
    %30 = vector.multi_reduction <maximumf>, %29, %cst_20 [1] : vector<4x8x8xf32> to vector<4x8xf32>
    %31 = vector.shape_cast %30 : vector<4x8xf32> to vector<4x1x8xf32>
    %32 = vector.broadcast %31 : vector<4x1x8xf32> to vector<4x8x8xf32>
    %33 = arith.subf %29, %32 : vector<4x8x8xf32>
    %34 = math.exp %33 : vector<4x8x8xf32>
    %35 = vector.shape_cast %34 : vector<4x8x8xf32> to vector<32x8xf32>
    %36 = vector.shape_cast %31 : vector<4x1x8xf32> to vector<4x8xf32>
    %cst_21 = arith.constant dense<0.000000e+00> : vector<2x8xf32>
    %37 = tpu.matmul %28, %36, %cst_21 {dimension_numbers = #tpu.dot_dimension_numbers<[1], [0], [0], [1], [0, 0, 1, 1], [], []>} : vector<2x4xf32>, vector<4x8xf32>, vector<2x8xf32> -> vector<2x8xf32>
    %38 = vector.extract_strided_slice %35 {offsets = [0, 0], sizes = [16, 8], strides = [1, 1]} : vector<32x8xf32> to vector<16x8xf32>
    %39 = vector.extract_strided_slice %35 {offsets = [16, 0], sizes = [16, 8], strides = [1, 1]} : vector<32x8xf32> to vector<16x8xf32>
    %cst_22 = arith.constant dense<0.000000e+00> : vector<16x8xf32>
    %40 = tpu.matmul %26, %38, %cst_22 {dimension_numbers = #tpu.dot_dimension_numbers<[1], [0], [0], [1], [0, 0, 1, 1], [], []>} : vector<16x16xf32>, vector<16x8xf32>, vector<16x8xf32> -> vector<16x8xf32>
    %41 = arith.mulf %40, %39 : vector<16x8xf32>
    %cst_23 = arith.constant dense<0.000000e+00> : vector<2x8xf32>
    %42 = tpu.matmul %27, %41, %cst_23 {dimension_numbers = #tpu.dot_dimension_numbers<[1], [0], [0], [1], [0, 0, 1, 1], [], []>} : vector<2x16xf32>, vector<16x8xf32>, vector<2x8xf32> -> vector<2x8xf32>
    %cst_24 = arith.constant 1.17549435E-38 : f32
    %43 = vector.broadcast %cst_24 : f32 to vector<2x8xf32>
    %44 = arith.maximumf %42, %43 : vector<2x8xf32>
    %45 = math.log %44 : vector<2x8xf32>
    %46 = arith.addf %45, %37 : vector<2x8xf32>
    %c0_25 = arith.constant 0 : index
    %c0_26 = arith.constant 0 : index
    %47 = vector.load %arg9[%c0_25, %c0_26] : memref<2x1xf32, #tpu.memory_space<vmem>>, vector<2x1xf32>
    %48 = vector.broadcast %47 : vector<2x1xf32> to vector<2x8xf32>
    %49 = arith.addf %46, %48 : vector<2x8xf32>
    %cst_27 = arith.constant dense<0xFF800000> : vector<8xf32>
    %50 = vector.multi_reduction <maximumf>, %49, %cst_27 [0] : vector<2x8xf32> to vector<8xf32>
    %51 = vector.shape_cast %50 : vector<8xf32> to vector<1x8xf32>
    %52 = vector.broadcast %51 : vector<1x8xf32> to vector<2x8xf32>
    %53 = arith.subf %49, %52 : vector<2x8xf32>
    %54 = math.exp %53 : vector<2x8xf32>
    %cst_28 = arith.constant dense<0.000000e+00> : vector<8xf32>
    %55 = vector.multi_reduction <add>, %54, %cst_28 [0] : vector<2x8xf32> to vector<8xf32>
    %56 = vector.shape_cast %55 : vector<8xf32> to vector<1x8xf32>
    %57 = math.log %56 : vector<1x8xf32>
    %58 = arith.addf %57, %51 : vector<1x8xf32>
    %c0_29 = arith.constant 0 : index
    %c0_30 = arith.constant 0 : index
    %59 = vector.load %arg10[%c0_29, %c0_30] : memref<1x8xf32, #tpu.memory_space<vmem>>, vector<1x8xf32>
    tpu.vector_store %arg10[%c0_29, %c0_30], %58 {strides = array<i32>} : memref<1x8xf32, #tpu.memory_space<vmem>>, vector<1x8xf32>,
    return
  }
  func.func @transform_0(%arg0: i32) -> (i32, i32) {
    %c0_i32 = arith.constant 0 : i32
    %c0_i32_0 = arith.constant 0 : i32
    return %c0_i32, %arg0 : i32, i32
  }
  func.func @transform_1(%arg0: i32) -> (i32, i32) {
    %c0_i32 = arith.constant 0 : i32
    %c0_i32_0 = arith.constant 0 : i32
    %c0_i32_1 = arith.constant 0 : i32
    return %c0_i32, %c0_i32_0 : i32, i32
  }
  func.func @transform_2(%arg0: i32) -> (i32, i32) {
    %c0_i32 = arith.constant 0 : i32
    %c0_i32_0 = arith.constant 0 : i32
    %c0_i32_1 = arith.constant 0 : i32
    return %c0_i32, %c0_i32_0 : i32, i32
  }
  func.func @transform_3(%arg0: i32) -> (i32, i32) {
    %c0_i32 = arith.constant 0 : i32
    %c0_i32_0 = arith.constant 0 : i32
    %c0_i32_1 = arith.constant 0 : i32
    return %c0_i32, %c0_i32_0 : i32, i32
  }
  func.func @transform_4(%arg0: i32) -> (i32, i32) {
    %c0_i32 = arith.constant 0 : i32
    %c0_i32_0 = arith.constant 0 : i32
    %c0_i32_1 = arith.constant 0 : i32
    return %c0_i32, %c0_i32_0 : i32, i32
  }
  func.func @transform_5(%arg0: i32) -> (i32, i32) {
    %c0_i32 = arith.constant 0 : i32
    %c0_i32_0 = arith.constant 0 : i32
    %c0_i32_1 = arith.constant 0 : i32
    return %c0_i32, %c0_i32_0 : i32, i32
  }
  func.func @transform_6(%arg0: i32) -> (i32, i32) {
    %c0_i32 = arith.constant 0 : i32
    %c0_i32_0 = arith.constant 0 : i32
    %c0_i32_1 = arith.constant 0 : i32
    return %c0_i32, %c0_i32_0 : i32, i32
  }
  func.func @transform_7(%arg0: i32) -> (i32, i32) {
    %c0_i32 = arith.constant 0 : i32
    %c0_i32_0 = arith.constant 0 : i32
    %c0_i32_1 = arith.constant 0 : i32
    return %c0_i32, %c0_i32_0 : i32, i32
  }
  func.func @transform_8(%arg0: i32) -> (i32, i32) {
    %c0_i32 = arith.constant 0 : i32
    %c0_i32_0 = arith.constant 0 : i32
    %c0_i32_1 = arith.constant 0 : i32
    return %c0_i32, %c0_i32_0 : i32, i32
  }
  func.func @transform_9(%arg0: i32) -> (i32, i32) {
    %c0_i32 = arith.constant 0 : i32
    %c0_i32_0 = arith.constant 0 : i32
    return %c0_i32, %arg0 : i32, i32
  }
}

</mosaic_0001>

<bundles_post_ra>
// kernel: eq.2
= control target key start
LH: loop header
LB: loop body
LE: loop exit
PB: predicated region body
PF: predicated region fallthrough
CT: control target
= control target key end

     0   :  { %s7_s6 = smov 3  ;;  %s21_s9 = smov 3  ;;  %vm4_vm0 = vcmask 31744   ;;  %vm11_vm1 = vcmask 162944   ;;  %vm18_vm2 = vcmask 130144   ;;  %vm25_vm3 = vcmask 97344   ;;  %s80_s0 = inlined_call_operand.vmem [shape: s32[2,5,4], index: 0, kind: input, shape index: {}]   ;;  %s81_s1 = inlined_call_operand.vmem [shape: s32[2,20], index: 1, kind: output, shape index: {}]  }
   0x1   :  { %v40_v0 = vld [vmem:[%s80_s0 + $0x4] ss:$8 sm:%s7_s6]   ;;  %s48_s10 = smov 16   ;;  %v42_v1 = vld [vmem:[%s80_s0 + $0x2] ss:$8 sm:%s21_s9]   ;;  %s14_s13 = smov 3 }
   0x2   :  { %9 = vrot.lane.b32.xlu0 %v40_v0, %s48_s10  ;;  %s49_s14 = smov 8   ;;  %v41_v2 = vld [vmem:[%s80_s0 + $0x3] ss:$8 sm:%s14_s13]   ;;  %s28_s17 = smov 3  ;;  %vm32_vm4 = vcmask 64544  }
   0x3   :  { %23 = vrot.lane.b32.xlu1 %v42_v1, %s49_s14  ;;  %v43_v3 = vld [vmem:[%s80_s0 + $0x1] ss:$8 sm:%s28_s17]   ;;  %s2_s20 = smov 3  ;;  %s51_s23 = smov 4  }
   0x4   :  { %v3_v4 = vld [vmem:[%s80_s0] ss:$8 sm:%s2_s20]   ;;  %s50_s0 = smov 12  }
   0x5   :  { %5 = vst.msk [vmem:[#allocation0] sm:$0x3] %vm4_vm0, %v3_v4  }
   0x6   :  { %16 = vrot.lane.b32.xlu0 %v41_v2, %s50_s0 }
   0x7   :  { %30 = vrot.lane.b32.xlu1 %v43_v3, %s51_s23 }
  0x74   :  { %v10_v5 = vpop.permute.xlu0 %9  }
  0x75   :  { %12 = vst.msk [vmem:[#allocation0] sm:$0x3] %vm11_vm1, %v10_v5   ;;  %v24_v6 = vpop.permute.xlu1 %23  }
  0x78   :  { %v17_v7 = vpop.permute.xlu0 %16  }
  0x79   :  { %19 = vst.msk [vmem:[#allocation0] sm:$0x3] %vm18_vm2, %v17_v7   ;;  %v31_v8 = vpop.permute.xlu1 %30  }
  0x7a   :  { %26 = vst.msk [vmem:[#allocation0] sm:$0x3] %vm25_vm3, %v24_v6  }
  0x7b   :  { %33 = vst.msk [vmem:[#allocation0] sm:$0x3] %vm32_vm4, %v31_v8  }
  0x82   :  { %v37_v9 = vld [vmem:[#allocation0] sm:$0x3] }
  0x83   :  { %39 = vst [vmem:[%s81_s1] sm:$0x3] %v37_v9 }

// kernel: fwd.1
= control target key start
LH: loop header
LB: loop body
LE: loop exit
PB: predicated region body
PF: predicated region fallthrough
CT: control target
= control target key end

     0   :  { %vm67_vm0 = vcmask 785408   ;;  %vm241_vm1 = vcmask 64512   ;;  %vm330_vm2 = vcmask 1041409   ;;  %vm332_vm3 = vcmask 1042434   ;;  %s2018_s0 = inlined_call_operand.vmem [shape: s8[96,8], index: 0, kind: input, shape index: {}]   ;;  %s2019_s1 = inlined_call_operand.vmem [shape: f32[64,96], index: 1, kind: input, shape index: {}]   ;;  %s2020_s4 = inlined_call_operand.vmem [shape: f32[32,8], index: 4, kind: input, shape index: {}]   ;;  %s2021_s2 = inlined_call_operand.vmem [shape: f32[256,32], index: 2, kind: input, shape index: {}]   ;;  %s2022_s3 = inlined_call_operand.vmem [shape: f32[32,256], index: 3, kind: input, shape index: {}]   ;;  %s2023_s5 = inlined_call_operand.vmem [shape: f32[16,16], index: 5, kind: input, shape index: {}]   ;;  %s2024_s7 = inlined_call_operand.vmem [shape: f32[2,4], index: 7, kind: input, shape index: {}]   ;;  %s2025_s8 = inlined_call_operand.vmem [shape: f32[2,1], index: 8, kind: input, shape index: {}]   ;;  %s2026_s6 = inlined_call_operand.vmem [shape: f32[2,16], index: 6, kind: input, shape index: {}]   ;;  %s2027_s9 = inlined_call_operand.vmem [shape: f32[1,8], index: 9, kind: output, shape index: {}]  }
   0x1   :  { %v32_v0 = vld [vmem:[%s2018_s0] sm:$0xff]  ;;  %v33_v4 = vld [vmem:[%s2018_s0 + $0x8] sm:$0xff]  ;;  %v34_v7 = vld [vmem:[%s2018_s0 + $0x10] sm:$0xff]  ;;  %vm334_vm4 = vcmask 1043459   ;;  %vm336_vm5 = vcmask 1044484   ;;  %vm338_vm6 = vcmask 1045509  }
   0x2   :  { %v1502_v1 = vunpack.c.l.s8.bf16 %v32_v0  ;;  %v1506_v2 = vunpack.c.h.s8.bf16 %v32_v0  ;;  %v59_v3 = vld [vmem:[%s2019_s1] sm:$0xff]  ;;  %v1510_v5 = vunpack.c.l.s8.bf16 %v33_v4  ;;  %v1514_v6 = vunpack.c.h.s8.bf16 %v33_v4  ;;  %v60_v10 = vld [vmem:[%s2019_s1 + $0x8] sm:$0xff]  ;;  %v61_v11 = vld [vmem:[%s2019_s1 + $0x10] sm:$0xff] }
   0x3   :  { %1407 = vmatprep.mubr.msk.f32.mxu0 %vm67_vm0, %v59_v3  ;;  %v1518_v8 = vunpack.c.l.s8.bf16 %v34_v7  ;;  %v1522_v9 = vunpack.c.h.s8.bf16 %v34_v7  ;;  %v62_v12 = vld [vmem:[%s2019_s1 + $0x18] sm:$0xff]  ;;  %v63_v13 = vld [vmem:[%s2019_s1 + $0x20] sm:$0xff]  ;;  %v64_v14 = vld [vmem:[%s2019_s1 + $0x28] sm:$0xff]  ;;  %vm340_vm7 = vcmask 1046534   ;;  %vm342_vm8 = vcmask 1047559  }
   0x4   :  { %1503 = vmatprep.subr.bf16.mxu0 %v1502_v1  ;;  %v65_v15 = vld [vmem:[%s2019_s1 + $0x30] sm:$0xff]  ;;  %v66_v16 = vld [vmem:[%s2019_s1 + $0x38] sm:$0xff]  ;;  %v237_v17 = vld [vmem:[%s2020_s4] sm:$0xff]  ;;  %vm442_vm9 = vcmask 261120   ;;  %vm1025_vm10 = vcmask 130048   ;;  %vm952_vm11 = vcmask 1043456  }
   0x5   :  { %1505 = vmatpush3.bf16.msra.mxu0 %v1502_v1  ;;  %1421 = vmatprep.mubr.msk.f32.mxu1 %vm241_vm1, %v237_v17  ;;  %vm1617_vm12 = vmmov 0   ;;  %vm948_vm13 = vcmask 31744   ;;  %vm1193_vm14 = vcmask 58368   ;;  %vm1214_vm15 = vcmask 57344  }
   0x6   :  { %1507 = vmatprep.subr.bf16.mxu0 %v1506_v2 }
   0x9   :  { %1509 = vmatpush3.bf16.msra.mxu0 %v1506_v2 }
   0xa   :  { %1511 = vmatprep.subr.bf16.mxu0 %v1510_v5 }
   0xd   :  { %1513 = vmatpush3.bf16.msra.mxu0 %v1510_v5 }
   0xe   :  { %1515 = vmatprep.subr.bf16.mxu0 %v1514_v6 }
  0x11   :  { %1517 = vmatpush3.bf16.msra.mxu0 %v1514_v6 }
  0x12   :  { %1519 = vmatprep.subr.bf16.mxu0 %v1518_v8 }
  0x15   :  { %1521 = vmatpush3.bf16.msra.mxu0 %v1518_v8 }
  0x16   :  { %1523 = vmatprep.subr.bf16.mxu0 %v1522_v9 }
  0x19   :  { %1525 = vmatpush3.bf16.msra.mxu0 %v1522_v9 }
  0x1c   :  { %1408 = vmatmul.mubr.msk.f32.vlgmr.msra.gmra.mrb[0].mxu0 %vm67_vm0, %v60_v10 }
  0x1d   :  { %1410 = vmatprep.mubr.msk.f32.mxu0 %vm67_vm0, %v61_v11 }
  0x20   :  { %1411 = vmatmul.mubr.msk.f32.gmra.mrb[2].mxu0 %vm67_vm0, %v62_v12 }
  0x21   :  { %1413 = vmatprep.mubr.msk.f32.mxu0 %vm67_vm0, %v63_v13 }
  0x24   :  { %1414 = vmatmul.mubr.msk.f32.gmra.mrb[4].mxu0 %vm67_vm0, %v64_v14 }
  0x25   :  { %1416 = vmatprep.mubr.msk.f32.mxu0 %vm67_vm0, %v65_v15 }
  0x28   :  { %1417 = vmatmul.mubr.msk.f32.gmra.mrb[6].mxu0 %vm67_vm0, %v66_v16 }
  0xef   :  { %v1409_v18 = vpop.f32.mrb[0].mxu0 }
  0xf0   :  { %v249_v19 = vsel %vm241_vm1, %v1409_v18, -inf  ;;  %v158_v20 = vpop.f32.mrb[1].mxu0 }
  0xf1   :  { %v250_v21 = vrot.slane %v249_v19, 4  ;;  %v242_v22 = vsel %vm241_vm1, %v158_v20, -inf }
  0xf2   :  { %v243_v23 = vrot.slane %v242_v22, 4 }
  0xf3   :  { %v251_v24 = vmax.f32 %v249_v19, %v250_v21  ;;  %v1412_v25 = vpop.f32.mrb[2].mxu0 }
  0xf4   :  { %v244_v26 = vmax.f32 %v242_v22, %v243_v23  ;;  %v263_v27 = vsel %vm241_vm1, %v1412_v25, -inf  ;;  %v168_v28 = vpop.f32.mrb[3].mxu0 }
  0xf5   :  { %v252_v29 = vrot.slane %v251_v24, 2  ;;  %v264_v30 = vrot.slane %v263_v27, 4  ;;  %v256_v31 = vsel %vm241_vm1, %v168_v28, -inf }
  0xf6   :  { %v245_v32 = vrot.slane %v244_v26, 2  ;;  %v257_v33 = vrot.slane %v256_v31, 4 }
  0xf7   :  { %v253_v34 = vmax.f32 %v251_v24, %v252_v29  ;;  %v265_v35 = vmax.f32 %v263_v27, %v264_v30  ;;  %v1719_v36 = vpop.f32.mrb[4].mxu0 }
  0xf8   :  { %v246_v37 = vmax.f32 %v244_v26, %v245_v32  ;;  %v258_v38 = vmax.f32 %v256_v31, %v257_v33  ;;  %v277_v39 = vsel %vm241_vm1, %v1719_v36, -inf  ;;  %v1723_v40 = vpop.f32.mrb[5].mxu0 }
  0xf9   :  { %v254_v41 = vrot.slane %v253_v34, 1  ;;  %v266_v42 = vrot.slane %v265_v35, 2  ;;  %v278_v43 = vrot.slane %v277_v39, 4  ;;  %v270_v44 = vsel %vm241_vm1, %v1723_v40, -inf }
  0xfa   :  { %v247_v45 = vrot.slane %v246_v37, 1  ;;  %v259_v46 = vrot.slane %v258_v38, 2  ;;  %v271_v47 = vrot.slane %v270_v44, 4 }
  0xfb   :  { %v255_v48 = vmax.f32 %v253_v34, %v254_v41  ;;  %v267_v49 = vmax.f32 %v265_v35, %v266_v42  ;;  %v279_v50 = vmax.f32 %v277_v39, %v278_v43  ;;  %v1727_v51 = vpop.f32.mrb[6].mxu0 }
  0xfc   :  { %v248_v52 = vmax.f32 %v246_v37, %v247_v45  ;;  %v260_v53 = vmax.f32 %v258_v38, %v259_v46  ;;  %v272_v54 = vmax.f32 %v270_v44, %v271_v47  ;;  %v291_v55 = vsel %vm241_vm1, %v1727_v51, -inf  ;;  %v1731_v56 = vpop.f32.mrb[7].mxu0  ;;  %v238_v44 = vld [vmem:[%s2020_s4 + $0x8] sm:$0xff]  ;;  %v239_v45 = vld [vmem:[%s2020_s4 + $0x10] sm:$0xff]  ;;  %v240_v47 = vld [vmem:[%s2020_s4 + $0x18] sm:$0xff] }
  0xfd   :  { %v299_v57 = vsub.f32 %v1409_v18, %v255_v48  ;;  %v268_v58 = vrot.slane %v267_v49, 1  ;;  %v280_v59 = vrot.slane %v279_v50, 2  ;;  %v292_v60 = vrot.slane %v291_v55, 4 }
  0xfe   :  { %v298_v61 = vsub.f32 %v158_v20, %v248_v52  ;;  %v331_v62 = vsel %vm330_vm2, %v255_v48, %v248_v52  ;;  %v261_v63 = vrot.slane %v260_v53, 1  ;;  %v273_v0 = vrot.slane %v272_v54, 2  ;;  %v197_v48 = vld [vmem:[%s2021_s2] sm:$0xff]  ;;  %v200_v52 = vld [vmem:[%s2021_s2 + $0x18] sm:$0xff] }
  0xff   :  { %v308_v1 = vmul.f32 1.442695, %v299_v57  ;;  %v269_v2 = vmax.f32 %v267_v49, %v268_v58  ;;  %v281_v3 = vmax.f32 %v279_v50, %v280_v59  ;;  %v293_v4 = vmax.f32 %v291_v55, %v292_v60  ;;  %v198_v49 = vld [vmem:[%s2021_s2 + $0x8] sm:$0xff]  ;;  %v199_v50 = vld [vmem:[%s2021_s2 + $0x10] sm:$0xff]  ;;  %v204_v57 = vld [vmem:[%s2021_s2 + $0x38] sm:$0xff] }
 0x100   :  { %v306_v5 = vmul.f32 1.442695, %v298_v61  ;;  %v262_v6 = vmax.f32 %v260_v53, %v261_v63  ;;  %v274_v7 = vmax.f32 %v272_v54, %v273_v0  ;;  %v284_v8 = vsel %vm241_vm1, %v1731_v56, -inf  ;;  %v201_v53 = vld [vmem:[%s2021_s2 + $0x20] sm:$0xff]  ;;  %v202_v54 = vld [vmem:[%s2021_s2 + $0x28] sm:$0xff]  ;;  %v203_v55 = vld [vmem:[%s2021_s2 + $0x30] sm:$0xff] }
 0x101   :  { %1578 = vpow2.f32 %v308_v1  ;;  %v301_v9 = vsub.f32 %v1412_v25, %v269_v2  ;;  %v282_v10 = vrot.slane %v281_v3, 1  ;;  %v294_v11 = vrot.slane %v293_v4, 2  ;;  %v205_v58 = vld [vmem:[%s2021_s2 + $0x40] sm:$0xff]  ;;  %v206_v59 = vld [vmem:[%s2021_s2 + $0x48] sm:$0xff]  ;;  %v207_v60 = vld [vmem:[%s2021_s2 + $0x50] sm:$0xff] }
 0x102   :  { %1580 = vpow2.f32 %v306_v5  ;;  %v300_v12 = vsub.f32 %v168_v28, %v262_v6  ;;  %v333_v13 = vsel %vm332_vm3, %v262_v6, %v331_v62  ;;  %v275_v14 = vrot.slane %v274_v7, 1  ;;  %v208_v61 = vld [vmem:[%s2021_s2 + $0x58] sm:$0xff]  ;;  %v209_v62 = vld [vmem:[%s2021_s2 + $0x60] sm:$0xff]  ;;  %v210_v63 = vld [vmem:[%s2021_s2 + $0x68] sm:$0xff] }
 0x103   :  { %v312_v15 = vmul.f32 1.442695, %v301_v9  ;;  %v1737_v16 = vmax.f32 %v281_v3, %v282_v10  ;;  %v295_v17 = vmax.f32 %v293_v4, %v294_v11  ;;  %v285_v18 = vrot.slane %v284_v8, 4  ;;  %v211_v0 = vld [vmem:[%s2021_s2 + $0x70] sm:$0xff]  ;;  %v212_v1 = vld [vmem:[%s2021_s2 + $0x78] sm:$0xff]  ;;  %v214_v3 = vld [vmem:[%s2021_s2 + $0x88] sm:$0xff] }
 0x104   :  { %v310_v19 = vmul.f32 1.442695, %v300_v12  ;;  %v1739_v20 = vmax.f32 %v274_v7, %v275_v14  ;;  %v335_v21 = vsel %vm334_vm4, %v269_v2, %v333_v13  ;;  %v213_v2 = vld [vmem:[%s2021_s2 + $0x80] sm:$0xff]  ;;  %v215_v4 = vld [vmem:[%s2021_s2 + $0x90] sm:$0xff]  ;;  %v216_v5 = vld [vmem:[%s2021_s2 + $0x98] sm:$0xff] }
 0x105   :  { %1582 = vpow2.f32 %v312_v15  ;;  %v303_v22 = vsub.f32 %v1719_v36, %v1737_v16  ;;  %v296_v23 = vrot.slane %v295_v17, 1  ;;  %v286_v24 = vmax.f32 %v284_v8, %v285_v18  ;;  %v217_v6 = vld [vmem:[%s2021_s2 + $0xa0] sm:$0xff]  ;;  %v218_v7 = vld [vmem:[%s2021_s2 + $0xa8] sm:$0xff]  ;;  %v219_v8 = vld [vmem:[%s2021_s2 + $0xb0] sm:$0xff] }
 0x106   :  { %1584 = vpow2.f32 %v310_v19  ;;  %v302_v25 = vsub.f32 %v1723_v40, %v1739_v20  ;;  %v337_v26 = vsel %vm336_vm5, %v1739_v20, %v335_v21  ;;  %v220_v9 = vld [vmem:[%s2021_s2 + $0xb8] sm:$0xff]  ;;  %v221_v10 = vld [vmem:[%s2021_s2 + $0xc0] sm:$0xff]  ;;  %v222_v11 = vld [vmem:[%s2021_s2 + $0xc8] sm:$0xff] }
 0x107   :  { %v1748_v27 = vmax.f32 %v295_v17, %v296_v23  ;;  %v287_v28 = vrot.slane %v286_v24, 2  ;;  %v339_v29 = vsel %vm338_vm6, %v1737_v16, %v337_v26  ;;  %v223_v12 = vld [vmem:[%s2021_s2 + $0xd0] sm:$0xff]  ;;  %v224_v13 = vld [vmem:[%s2021_s2 + $0xd8] sm:$0xff]  ;;  %v225_v14 = vld [vmem:[%s2021_s2 + $0xe0] sm:$0xff]  ;;  %v316_v21 = vmul.f32 1.442695, %v303_v22 }
 0x108   :  { %v226_v15 = vld [vmem:[%s2021_s2 + $0xe8] sm:$0xff]  ;;  %v227_v17 = vld [vmem:[%s2021_s2 + $0xf0] sm:$0xff]  ;;  %v228_v18 = vld [vmem:[%s2021_s2 + $0xf8] sm:$0xff]  ;;  %v314_v23 = vmul.f32 1.442695, %v302_v25 }
 0x109   :  { %v305_v30 = vsub.f32 %v1727_v51, %v1748_v27  ;;  %v288_v31 = vmax.f32 %v286_v24, %v287_v28  ;;  %v230_v19 = vld [vmem:[%s2022_s3 + $0x8] sm:$0xff]  ;;  %1586 = vpow2.f32 %v316_v21 }
 0x10a   :  { %860 = vmatprep.mubr.f32.mxu0 %v230_v19  ;;  %1588 = vpow2.f32 %v314_v23 }
 0x10b   :  { %v1579_v32 = vpop.eup %1578  ;;  %v289_v33 = vrot.slane %v288_v31, 1  ;;  %v320_v24 = vmul.f32 1.442695, %v305_v30 }
 0x10c   :  { %v1581_v34 = vpop.eup %1580 }
 0x10d   :  { %v1753_v35 = vmax.f32 %v288_v31, %v289_v33  ;;  %v1526_v37 = vpack.c.bf16 %v1579_v32, %v1581_v34  ;;  %1590 = vpow2.f32 %v320_v24 }
 0x10f   :  { %v1583_v38 = vpop.eup %1582  ;;  %v304_v39 = vsub.f32 %v1731_v56, %v1753_v35  ;;  %v341_v41 = vsel %vm340_vm7, %v1753_v35, %v339_v29 }
 0x110   :  { %v1585_v42 = vpop.eup %1584  ;;  %v343_v43 = vsel %vm342_vm8, %v1748_v27, %v341_v41 }
 0x111   :  { %1419 = vmatprep.subr.mxu1 %v343_v43  ;;  %v1530_v46 = vpack.c.bf16 %v1583_v38, %v1585_v42  ;;  %v318_v26 = vmul.f32 1.442695, %v304_v39 }
 0x112   :  { %1420 = vmatpush3.msra.mxu1 %v343_v43 }
 0x113   :  { %1422 = vmatmul.mubr.msk.f32.vlgmr.msra.gmra.mrb[0].mxu1 %vm241_vm1, %v238_v44  ;;  %1527 = vmatprep.subr.bf16.mxu1 %v1526_v37  ;;  %1592 = vpow2.f32 %v318_v26  ;;  %v1922_v16 = vpop.eup %1586 }
 0x114   :  { %1529 = vmatpush3.bf16.msra.mxu1 %v1526_v37  ;;  %1424 = vmatprep.mubr.msk.f32.mxu1 %vm241_vm1, %v239_v45  ;;  %v1924_v51 = vpop.eup %1588 }
 0x115   :  { %1531 = vmatprep.subr.bf16.mxu1 %v1530_v46 }
 0x117   :  { %1425 = vmatmul.mubr.msk.f32.gmra.mrb[2].mxu1 %vm241_vm1, %v240_v47  ;;  %v1928_v27 = vpop.eup %1590 }
 0x118   :  { %1533 = vmatpush3.bf16.msra.mxu1 %v1530_v46  ;;  %1435 = vmatprep.mubr.msk.f32.mxu1 %vm442_vm9, %v197_v48 }
 0x11b   :  { %1436 = vmatmul.mubr.msk.f32.vlgmr.msra.gmra.mrb[4].mxu1 %vm442_vm9, %v198_v49 }
 0x11c   :  { %1438 = vmatprep.mubr.msk.f32.mxu1 %vm442_vm9, %v199_v50 }
 0x11d   :  { %v1930_v32 = vpop.eup %1592 }
 0x11f   :  { %1439 = vmatmul.mubr.msk.f32.gmra.mrb[6].mxu1 %vm442_vm9, %v200_v52 }
 0x120   :  { %1441 = vmatprep.mubr.msk.f32.mxu1 %vm442_vm9, %v201_v53 }
 0x123   :  { %1442 = vmatmul.mubr.msk.f32.gmra.mrb[8].mxu1 %vm442_vm9, %v202_v54 }
 0x124   :  { %1444 = vmatprep.mubr.msk.f32.mxu1 %vm442_vm9, %v203_v55 }
 0x127   :  { %1445 = vmatmul.mubr.msk.f32.gmra.mrb[10].mxu1 %vm442_vm9, %v204_v57 }
 0x128   :  { %1447 = vmatprep.mubr.msk.f32.mxu1 %vm442_vm9, %v205_v58 }
 0x12b   :  { %1448 = vmatmul.mubr.msk.f32.gmra.mrb[12].mxu1 %vm442_vm9, %v206_v59 }
 0x12c   :  { %1450 = vmatprep.mubr.msk.f32.mxu1 %vm442_vm9, %v207_v60 }
 0x12f   :  { %1451 = vmatmul.mubr.msk.f32.gmra.mrb[14].mxu1 %vm442_vm9, %v208_v61 }
 0x130   :  { %1453 = vmatprep.mubr.msk.f32.mxu1 %vm442_vm9, %v209_v62 }
 0x133   :  { %1454 = vmatmul.mubr.msk.f32.gmra.mrb[16].mxu1 %vm442_vm9, %v210_v63 }
 0x134   :  { %1456 = vmatprep.mubr.msk.f32.mxu1 %vm442_vm9, %v211_v0 }
 0x137   :  { %1457 = vmatmul.mubr.msk.f32.gmra.mrb[18].mxu1 %vm442_vm9, %v212_v1 }
 0x138   :  { %1459 = vmatprep.mubr.msk.f32.mxu1 %vm442_vm9, %v213_v2 }
 0x13b   :  { %1460 = vmatmul.mubr.msk.f32.gmra.mrb[20].mxu1 %vm442_vm9, %v214_v3 }
 0x13c   :  { %1462 = vmatprep.mubr.msk.f32.mxu1 %vm442_vm9, %v215_v4 }
 0x13f   :  { %1463 = vmatmul.mubr.msk.f32.gmra.mrb[22].mxu1 %vm442_vm9, %v216_v5 }
 0x140   :  { %1465 = vmatprep.mubr.msk.f32.mxu1 %vm442_vm9, %v217_v6 }
 0x143   :  { %1466 = vmatmul.mubr.msk.f32.gmra.mrb[24].mxu1 %vm442_vm9, %v218_v7 }
 0x144   :  { %1468 = vmatprep.mubr.msk.f32.mxu1 %vm442_vm9, %v219_v8 }
 0x147   :  { %1469 = vmatmul.mubr.msk.f32.gmra.mrb[26].mxu1 %vm442_vm9, %v220_v9 }
 0x148   :  { %1471 = vmatprep.mubr.msk.f32.mxu1 %vm442_vm9, %v221_v10 }
 0x14b   :  { %1472 = vmatmul.mubr.msk.f32.gmra.mrb[28].mxu1 %vm442_vm9, %v222_v11 }
 0x14c   :  { %1474 = vmatprep.mubr.msk.f32.mxu1 %vm442_vm9, %v223_v12 }
 0x14f   :  { %1475 = vmatmul.mubr.msk.f32.gmra.mrb[30].mxu1 %vm442_vm9, %v224_v13 }
 0x150   :  { %1477 = vmatprep.mubr.msk.f32.mxu1 %vm442_vm9, %v225_v14 }
 0x153   :  { %1478 = vmatmul.mubr.msk.f32.gmra.mrb[32].mxu1 %vm442_vm9, %v226_v15 }
 0x154   :  { %1480 = vmatprep.mubr.msk.f32.mxu1 %vm442_vm9, %v227_v17 }
 0x157   :  { %1481 = vmatmul.mubr.msk.f32.gmra.mrb[34].mxu1 %vm442_vm9, %v228_v18 }
 0x1e6   :  { %v1914_v28 = vpop.f32.mrb[0].mxu1 }
 0x1e7   :  { %v1916_v29 = vpop.f32.mrb[1].mxu1 }
 0x1ea   :  { %v1918_v36 = vpop.f32.mrb[2].mxu1 }
 0x1eb   :  { %v1920_v40 = vpop.f32.mrb[3].mxu1 }
 0x1ee   :  { %v1437_v20 = vpop.f32.mrb[4].mxu1 }
 0x1ef   :  { %v765_v22 = vmul.f32 %v1922_v16, %v1437_v20  ;;  %v605_v25 = vpop.f32.mrb[5].mxu1 }
 0x1f0   :  { %v764_v56 = vmul.f32 %v1924_v51, %v605_v25 }
 0x1f2   :  { %v1536_v30 = vpack.c.bf16 %v765_v22, %v764_v56  ;;  %v1440_v31 = vpop.f32.mrb[6].mxu1 }
 0x1f3   :  { %v767_v33 = vmul.f32 %v1928_v27, %v1440_v31  ;;  %v615_v34 = vpop.f32.mrb[7].mxu1 }
 0x1f4   :  { %v766_v35 = vmul.f32 %v1930_v32, %v615_v34 }
 0x1f6   :  { %v1540_v37 = vpack.c.bf16 %v767_v33, %v766_v35  ;;  %v1443_v38 = vpop.f32.mrb[8].mxu1 }
 0x1f7   :  { %v769_v39 = vmul.f32 %v1922_v16, %v1443_v38  ;;  %v625_v41 = vpop.f32.mrb[9].mxu1 }
 0x1f8   :  { %v768_v42 = vmul.f32 %v1924_v51, %v625_v41 }
 0x1fa   :  { %v1544_v43 = vpack.c.bf16 %v769_v39, %v768_v42  ;;  %v1446_v44 = vpop.f32.mrb[10].mxu1 }
 0x1fb   :  { %v771_v45 = vmul.f32 %v1928_v27, %v1446_v44  ;;  %v635_v46 = vpop.f32.mrb[11].mxu1 }
 0x1fc   :  { %v770_v47 = vmul.f32 %v1930_v32, %v635_v46 }
 0x1fe   :  { %v1548_v48 = vpack.c.bf16 %v771_v45, %v770_v47  ;;  %v1449_v49 = vpop.f32.mrb[12].mxu1 }
 0x1ff   :  { %v773_v50 = vmul.f32 %v1922_v16, %v1449_v49  ;;  %v645_v52 = vpop.f32.mrb[13].mxu1 }
 0x200   :  { %v772_v53 = vmul.f32 %v1924_v51, %v645_v52 }
 0x202   :  { %v1552_v54 = vpack.c.bf16 %v773_v50, %v772_v53  ;;  %v1452_v55 = vpop.f32.mrb[14].mxu1 }
 0x203   :  { %v775_v57 = vmul.f32 %v1928_v27, %v1452_v55  ;;  %v655_v58 = vpop.f32.mrb[15].mxu1  ;;  %v236_v55 = vld [vmem:[%s2022_s3 + $0x38] sm:$0xff] }
 0x204   :  { %v774_v59 = vmul.f32 %v1930_v32, %v655_v58  ;;  %v1616_v58 = vmov 0.0  }
 0x206   :  { %v1556_v60 = vpack.c.bf16 %v775_v57, %v774_v59  ;;  %v1455_v61 = vpop.f32.mrb[16].mxu1  ;;  %v235_v57 = vld [vmem:[%s2022_s3 + $0x30] sm:$0xff]  ;;  %v897_v59 = vld [vmem:[%s2023_s5] sm:$0xff] }
 0x207   :  { %v777_v62 = vmul.f32 %v1922_v16, %v1455_v61  ;;  %v665_v63 = vpop.f32.mrb[17].mxu1  ;;  %1492 = vmatprep.mubr.msk.f32.mxu1 %vm1025_vm10, %v897_v59 }
 0x208   :  { %v776_v0 = vmul.f32 %v1924_v51, %v665_v63 }
 0x20a   :  { %v1560_v1 = vpack.c.bf16 %v777_v62, %v776_v0  ;;  %v1458_v2 = vpop.f32.mrb[18].mxu1 }
 0x20b   :  { %v779_v3 = vmul.f32 %v1928_v27, %v1458_v2  ;;  %v675_v4 = vpop.f32.mrb[19].mxu1 }
 0x20c   :  { %v778_v5 = vmul.f32 %v1930_v32, %v675_v4 }
 0x20e   :  { %v1564_v6 = vpack.c.bf16 %v779_v3, %v778_v5  ;;  %v1461_v7 = vpop.f32.mrb[20].mxu1 }
 0x20f   :  { %v781_v8 = vmul.f32 %v1922_v16, %v1461_v7  ;;  %v685_v9 = vpop.f32.mrb[21].mxu1 }
 0x210   :  { %v780_v10 = vmul.f32 %v1924_v51, %v685_v9 }
 0x212   :  { %v1534_v11 = vpack.c.bf16 %v781_v8, %v780_v10  ;;  %v1464_v12 = vpop.f32.mrb[22].mxu1 }
 0x213   :  { %v783_v13 = vmul.f32 %v1928_v27, %v1464_v12  ;;  %v695_v14 = vpop.f32.mrb[23].mxu1 }
 0x214   :  { %v782_v15 = vmul.f32 %v1930_v32, %v695_v14  ;;  %1535 = vmatprep.subr.bf16.mxu0 %v1534_v11 }
 0x215   :  { %1537 = vmatpush3.bf16.msra.mxu0 %v1536_v30 }
 0x216   :  { %v1538_v17 = vpack.c.bf16 %v783_v13, %v782_v15  ;;  %v1467_v18 = vpop.f32.mrb[24].mxu1 }
 0x217   :  { %v785_v19 = vmul.f32 %v1922_v16, %v1467_v18  ;;  %v705_v21 = vpop.f32.mrb[25].mxu1 }
 0x218   :  { %v784_v23 = vmul.f32 %v1924_v51, %v705_v21  ;;  %1539 = vmatprep.subr.bf16.mxu0 %v1538_v17 }
 0x219   :  { %1541 = vmatpush3.bf16.msra.mxu0 %v1540_v37 }
 0x21a   :  { %v1542_v24 = vpack.c.bf16 %v785_v19, %v784_v23  ;;  %v1470_v26 = vpop.f32.mrb[26].mxu1 }
 0x21b   :  { %v787_v20 = vmul.f32 %v1928_v27, %v1470_v26  ;;  %v715_v22 = vpop.f32.mrb[27].mxu1 }
 0x21c   :  { %v786_v25 = vmul.f32 %v1930_v32, %v715_v22  ;;  %1543 = vmatprep.subr.bf16.mxu0 %v1542_v24 }
 0x21d   :  { %1545 = vmatpush3.bf16.msra.mxu0 %v1544_v43 }
 0x21e   :  { %v1546_v56 = vpack.c.bf16 %v787_v20, %v786_v25  ;;  %v1473_v30 = vpop.f32.mrb[28].mxu1 }
 0x21f   :  { %v789_v31 = vmul.f32 %v1922_v16, %v1473_v30  ;;  %v725_v33 = vpop.f32.mrb[29].mxu1 }
 0x220   :  { %v788_v34 = vmul.f32 %v1924_v51, %v725_v33  ;;  %1547 = vmatprep.subr.bf16.mxu0 %v1546_v56 }
 0x221   :  { %1549 = vmatpush3.bf16.msra.mxu0 %v1548_v48 }
 0x222   :  { %v1550_v35 = vpack.c.bf16 %v789_v31, %v788_v34  ;;  %v1476_v37 = vpop.f32.mrb[30].mxu1 }
 0x223   :  { %v791_v38 = vmul.f32 %v1928_v27, %v1476_v37  ;;  %v735_v39 = vpop.f32.mrb[31].mxu1 }
 0x224   :  { %v790_v41 = vmul.f32 %v1930_v32, %v735_v39  ;;  %1551 = vmatprep.subr.bf16.mxu0 %v1550_v35 }
 0x225   :  { %1553 = vmatpush3.bf16.msra.mxu0 %v1552_v54  ;;  %v233_v54 = vld [vmem:[%s2022_s3 + $0x20] sm:$0xff] }
 0x226   :  { %v1554_v42 = vpack.c.bf16 %v791_v38, %v790_v41  ;;  %v1479_v43 = vpop.f32.mrb[32].mxu1 }
 0x227   :  { %v793_v44 = vmul.f32 %v1922_v16, %v1479_v43  ;;  %v745_v45 = vpop.f32.mrb[33].mxu1  ;;  %v229_v16 = vld [vmem:[%s2022_s3] sm:$0xff] }
 0x228   :  { %v792_v46 = vmul.f32 %v1924_v51, %v745_v45  ;;  %1555 = vmatprep.subr.bf16.mxu0 %v1554_v42  ;;  %v232_v51 = vld [vmem:[%s2022_s3 + $0x18] sm:$0xff] }
 0x229   :  { %1557 = vmatpush3.bf16.msra.mxu0 %v1556_v60 }
 0x22a   :  { %v1558_v47 = vpack.c.bf16 %v793_v44, %v792_v46  ;;  %v1482_v48 = vpop.f32.mrb[34].mxu1 }
 0x22b   :  { %v795_v49 = vmul.f32 %v1928_v27, %v1482_v48  ;;  %v755_v50 = vpop.f32.mrb[35].mxu1  ;;  %v231_v27 = vld [vmem:[%s2022_s3 + $0x10] sm:$0xff] }
 0x22c   :  { %v794_v52 = vmul.f32 %v1930_v32, %v755_v50  ;;  %1559 = vmatprep.subr.bf16.mxu0 %v1558_v47  ;;  %v234_v32 = vld [vmem:[%s2022_s3 + $0x28] sm:$0xff] }
 0x22d   :  { %1561 = vmatpush3.bf16.msra.mxu0 %v1560_v1 }
 0x22e   :  { %v1562_v53 = vpack.c.bf16 %v795_v49, %v794_v52 }
 0x230   :  { %1563 = vmatprep.subr.bf16.mxu0 %v1562_v53 }
 0x231   :  { %1565 = vmatpush3.bf16.msra.mxu0 %v1564_v6 }
 0x232   :  { %1483 = vmatprep.subr.mxu0 %v1616_v58 }
 0x234   :  { %861 = vmatmul.mubr.f32.vlgmr.msra.gmra.mrb[8].mxu0 %v229_v16 }
 0x235   :  { %865 = vmatprep.mubr.f32.mxu0 %v232_v51 }
 0x238   :  { %866 = vmatmul.mubr.f32.gmra.mrb[10].mxu0 %v231_v27 }
 0x239   :  { %870 = vmatprep.mubr.f32.mxu0 %v234_v32 }
 0x23c   :  { %871 = vmatmul.mubr.f32.gmra.mrb[12].mxu0 %v233_v54 }
 0x23d   :  { %875 = vmatprep.mubr.f32.mxu0 %v236_v55 }
 0x240   :  { %876 = vmatmul.mubr.f32.gmra.mrb[14].mxu0 %v235_v57 }
 0x241   :  { %1485 = vmatprep.mubr.msk.f32.mxu0 %vm1617_vm12, %v1616_v58 }
 0x307   :  { %v1362_v60 = vpop.f32.mrb[8].mxu0 }
 0x308   :  { %v1363_v61 = vpop.f32.mrb[9].mxu0 }
 0x309   :  { %v1364_v62 = vadd.f32 %v1363_v61, %v1362_v60 }
 0x30b   :  { %v881_v63 = vmax.f32 %v1364_v62, 1.1754944e-38  ;;  %v1365_v0 = vpop.f32.mrb[10].mxu0 }
 0x30c   :  { %v1366_v1 = vpop.f32.mrb[11].mxu0 }
 0x30d   :  { %1594 = vlog2.f32 %v881_v63  ;;  %v1367_v2 = vadd.f32 %v1366_v1, %v1365_v0  ;;  %v898_v1 = vld [vmem:[%s2023_s5 + $0x8] sm:$0xff] }
 0x30f   :  { %v882_v3 = vmax.f32 %v1367_v2, 1.1754944e-38  ;;  %v1368_v4 = vpop.f32.mrb[12].mxu0  ;;  %v900_v2 = vld [vmem:[%s2024_s7] sm:$0x3] }
 0x310   :  { %v1369_v5 = vpop.f32.mrb[13].mxu0 }
 0x311   :  { %1596 = vlog2.f32 %v882_v3  ;;  %v1370_v6 = vadd.f32 %v1369_v5, %v1368_v4  ;;  %v1618_v3 = vmov 0.0|0.0   ;;  %v1619_v4 = vmov 0   ;;  %v1186_v5 = vld [vmem:[%s2025_s8] sm:$0x3] }
 0x312   :  { %1577 = vset.pattern.permute.xlu0 %v1619_v4 }
 0x313   :  { %v883_v7 = vmax.f32 %v1370_v6, 1.1754944e-38  ;;  %v1371_v8 = vpop.f32.mrb[14].mxu0  ;;  %1189 = vperm.xlu0 %1577, %v1186_v5  }
 0x314   :  { %v1372_v9 = vpop.f32.mrb[15].mxu0 }
 0x315   :  { %1598 = vlog2.f32 %v883_v7  ;;  %v1373_v10 = vadd.f32 %v1372_v9, %v1371_v8 }
 0x317   :  { %v1595_v11 = vpop.eup %1594  ;;  %v884_v12 = vmax.f32 %v1373_v10, 1.1754944e-38 }
 0x318   :  { %v886_v13 = vmul.f32 0.6931472, %v1595_v11 }
 0x319   :  { %1600 = vlog2.f32 %v884_v12 }
 0x31a   :  { %v893_v14 = vadd.f32 %v886_v13, %v1916_v29 }
 0x31b   :  { %v1597_v15 = vpop.eup %1596 }
 0x31c   :  { %v901_v17 = vsel %vm241_vm1, %v893_v14, -inf  ;;  %v888_v18 = vmul.f32 0.6931472, %v1597_v15 }
 0x31d   :  { %v902_v19 = vrot.slane %v901_v17, 4 }
 0x31e   :  { %v894_v21 = vadd.f32 %v1914_v28, %v888_v18 }
 0x31f   :  { %v1599_v23 = vpop.eup %1598  ;;  %v903_v24 = vmax.f32 %v901_v17, %v902_v19 }
 0x320   :  { %v908_v26 = vsel %vm241_vm1, %v894_v21, -inf  ;;  %v890_v20 = vmul.f32 0.6931472, %v1599_v23 }
 0x321   :  { %v904_v22 = vrot.slane %v903_v24, 2  ;;  %v909_v25 = vrot.slane %v908_v26, 4 }
 0x322   :  { %v895_v56 = vadd.f32 %v890_v20, %v1920_v40 }
 0x323   :  { %v1601_v30 = vpop.eup %1600  ;;  %v905_v31 = vmax.f32 %v903_v24, %v904_v22  ;;  %v910_v33 = vmax.f32 %v908_v26, %v909_v25 }
 0x324   :  { %v915_v29 = vsel %vm241_vm1, %v895_v56, -inf  ;;  %v892_v34 = vmul.f32 0.6931472, %v1601_v30 }
 0x325   :  { %v906_v35 = vrot.slane %v905_v31, 1  ;;  %v911_v37 = vrot.slane %v910_v33, 2  ;;  %v916_v38 = vrot.slane %v915_v29, 4 }
 0x326   :  { %v896_v28 = vadd.f32 %v1918_v36, %v892_v34 }
 0x327   :  { %v907_v39 = vmax.f32 %v905_v31, %v906_v35  ;;  %v912_v41 = vmax.f32 %v910_v33, %v911_v37  ;;  %v917_v42 = vmax.f32 %v915_v29, %v916_v38 }
 0x328   :  { %v922_v43 = vsel %vm241_vm1, %v896_v28, -inf }
 0x329   :  { %v929_v44 = vsub.f32 %v893_v14, %v907_v39  ;;  %v913_v45 = vrot.slane %v912_v41, 1  ;;  %v918_v46 = vrot.slane %v917_v42, 2  ;;  %v923_v40 = vrot.slane %v922_v43, 4 }
 0x32b   :  { %v914_v47 = vmax.f32 %v912_v41, %v913_v45  ;;  %v919_v48 = vmax.f32 %v917_v42, %v918_v46  ;;  %v924_v49 = vmax.f32 %v922_v43, %v923_v40  ;;  %v933_v50 = vmul.f32 1.442695, %v929_v44 }
 0x32d   :  { %v930_v52 = vsub.f32 %v894_v21, %v914_v47  ;;  %v920_v53 = vrot.slane %v919_v48, 1  ;;  %v925_v16 = vrot.slane %v924_v49, 2  ;;  %v945_v51 = vsel %vm330_vm2, %v914_v47, %v907_v39 }
 0x32e   :  { %1602 = vpow2.f32 %v933_v50 }
 0x32f   :  { %v935_v27 = vmul.f32 1.442695, %v930_v52  ;;  %v921_v36 = vmax.f32 %v919_v48, %v920_v53  ;;  %v926_v32 = vmax.f32 %v924_v49, %v925_v16 }
 0x331   :  { %1604 = vpow2.f32 %v935_v27  ;;  %v931_v54 = vsub.f32 %v895_v56, %v921_v36  ;;  %v927_v55 = vrot.slane %v926_v32, 1  ;;  %v946_v57 = vsel %vm332_vm3, %v921_v36, %v945_v51 }
 0x333   :  { %v928_v59 = vmax.f32 %v926_v32, %v927_v55  ;;  %v937_v7 = vmul.f32 1.442695, %v931_v54 }
 0x335   :  { %v932_v60 = vsub.f32 %v896_v28, %v928_v59  ;;  %v947_v61 = vsel %vm334_vm4, %v928_v59, %v946_v57 }
 0x336   :  { %1484 = vmatpush3.msk.msra.mxu0 %vm952_vm11, %v947_v61 }
 0x337   :  { %1486 = vmatmul.mubr.msk.f32.vlgmr.msra.gmra.mrb[16].mxu0 %vm948_vm13, %v900_v2  ;;  %1570 = vmatprep.subr.bf16.mxu0 %v1618_v3  ;;  %v939_v6 = vmul.f32 1.442695, %v932_v60 }
 0x338   :  { %v1603_v62 = vpop.eup %1602  ;;  %1499 = vmatprep.mubr.msk.f32.mxu0 %vm1617_vm12, %v1616_v58  ;;  %v899_v58 = vld [vmem:[%s2026_s6] sm:$0x3] }
 0x339   :  { %1606 = vpow2.f32 %v939_v6 }
 0x33a   :  { %1608 = vpow2.f32 %v937_v7 }
 0x33b   :  { %v1605_v63 = vpop.eup %1604 }
 0x33c   :  { %v1566_v0 = vpack.c.bf16 %v1605_v63, %v1603_v62 }
 0x33e   :  { %1567 = vmatprep.subr.bf16.mxu1 %v1566_v0 }
 0x33f   :  { %1569 = vmatpush3.bf16.msra.mxu1 %v1566_v0 }
 0x342   :  { %1493 = vmatmul.mubr.msk.f32.vlgmr.msra.gmra.mrb[36].mxu1 %vm1025_vm10, %v898_v1 }
 0x343   :  { %v1607_v8 = vpop.eup %1606 }
 0x344   :  { %v1609_v10 = vpop.eup %1608 }
 0x392   :  { %v1190_v26 = vpop.permute.xlu0 %1189 }
 0x40a   :  { %v1021_v15 = vpop.f32.mrb[16].mxu0 }
 0x40b   :  { %v1487_v17 = vpop.f32.mrb[17].mxu0 }
 0x415   :  { %v1494_v9 = vpop.f32.mrb[36].mxu1 }
 0x416   :  { %v1108_v11 = vmul.f32 %v1607_v8, %v1494_v9  ;;  %v1098_v12 = vpop.f32.mrb[37].mxu1 }
 0x417   :  { %v1107_v13 = vmul.f32 %v1609_v10, %v1098_v12 }
 0x419   :  { %v1571_v14 = vpack.c.bf16 %v1108_v11, %v1107_v13 }
 0x41b   :  { %1572 = vmatpush3.bf16.msra.mxu0 %v1571_v14 }
 0x41e   :  { %1500 = vmatmul.mubr.msk.f32.vlgmr.msra.gmra.mrb[18].mxu0 %vm1025_vm10, %v899_v58 }
 0x4f1   :  { %v1178_v18 = vpop.f32.mrb[18].mxu0 }
 0x4f2   :  { %v1182_v19 = vmax.f32 %v1178_v18, 1.1754944e-38  ;;  %v1501_v21 = vpop.f32.mrb[19].mxu0 }
 0x4f4   :  { %1610 = vlog2.f32 %v1182_v19 }
 0x4fe   :  { %v1611_v23 = vpop.eup %1610 }
 0x4ff   :  { %v1184_v24 = vmul.f32 0.6931472, %v1611_v23 }
 0x501   :  { %v1185_v20 = vadd.f32 %v1184_v24, %v1021_v15 }
 0x503   :  { %v1192_v22 = vadd.f32 %v1190_v26, %v1185_v20 }
 0x505   :  { %v1194_v25 = vsel %vm1193_vm14, %v1192_v22, -inf }
 0x506   :  { %v1195_v56 = vrot.slane %v1194_v25, 4 }
 0x508   :  { %v1196_v30 = vmax.f32 %v1194_v25, %v1195_v56 }
 0x50a   :  { %v1197_v31 = vrot.slane %v1196_v30, 2 }
 0x50c   :  { %v1198_v33 = vmax.f32 %v1196_v30, %v1197_v31 }
 0x50e   :  { %v1199_v29 = vrot.slane %v1198_v33, 1 }
 0x510   :  { %v1200_v34 = vmax.f32 %v1198_v33, %v1199_v29 }
 0x512   :  { %v1201_v35 = vsub.f32 %v1192_v22, %v1200_v34 }
 0x514   :  { %v1202_v37 = vmul.f32 1.442695, %v1201_v35 }
 0x516   :  { %1612 = vpow2.f32 %v1202_v37 }
 0x520   :  { %v1613_v38 = vpop.eup %1612 }
 0x521   :  { %v1204_v28 = vsel %vm1193_vm14, %v1613_v38, 0.0 }
 0x522   :  { %v1205_v39 = vrot.slane %v1204_v28, 4 }
 0x524   :  { %v1206_v41 = vadd.f32 %v1205_v39, %v1204_v28 }
 0x526   :  { %v1207_v42 = vrot.slane %v1206_v41, 2 }
 0x528   :  { %v1208_v43 = vadd.f32 %v1207_v42, %v1206_v41 }
 0x52a   :  { %v1209_v44 = vrot.slane %v1208_v43, 1 }
 0x52c   :  { %v1210_v45 = vadd.f32 %v1209_v44, %v1208_v43 }
 0x52e   :  { %1614 = vlog2.f32 %v1210_v45 }
 0x538   :  { %v1615_v46 = vpop.eup %1614 }
 0x539   :  { %v1212_v40 = vmul.f32 0.6931472, %v1615_v46 }
 0x53b   :  { %v1213_v47 = vadd.f32 %v1212_v40, %v1200_v34 }
 0x53d   :  { %1215 = vst.msk [vmem:[%s2027_s9] sm:$0x1] %vm1214_vm15, %v1213_v47 }

</bundles_post_ra>
